<compile_context>
chip_gen: v6e
topology: v6e:2x2x1
jax: 0.10.0
libtpu: 0.0.40
codegen_flags: <defaults>
</compile_context>

<pallas_src>
import functools
import math

import jax
import jax.numpy as jnp
from jax.experimental import pallas as pl
from jax.experimental.pallas import tpu as pltpu

_LANE = 128   # vreg lane width
_SUB = 8      # vreg sublane count


def _round_up(x, m):
    return ((x + m - 1) // m) * m


def _round_down(x, m):
    return (x // m) * m


def _vmem_capacity_bytes():
    """Per-core physical VMEM (64 MiB v7x, 128 MiB v5e/v6e); safe fallback."""
    try:
        return int(pltpu.get_tpu_info().vmem_capacity_bytes)
    except Exception:
        return 64 * 1024 * 1024


# ---------------------------------------------------------------------------
# Kernels
# ---------------------------------------------------------------------------
def _ce_resident_kernel(*refs, has_weights, want_w):
    """Weighted NLL for one block with the whole class axis resident.

    The class axis is always block axis 1, so the same body serves both:
      rows layout : logits block (tile_m, C),    targets (tile_m, 1)
      NC*  layout : logits block (1, C, tile_s), targets (1, 1, tile_s)
    Emits per-element loss (and optionally the selected class weight).
    """
    it = iter(refs)
    x_ref = next(it)
    t_ref = next(it)
    w_ref = next(it) if has_weights else None
    loss_ref = next(it)
    wout_ref = next(it) if want_w else None

    x = x_ref[...].astype(jnp.float32)
    t = t_ref[...]

    # Numerically stable log-softmax over the class axis (axis 1).
    m = jnp.max(x, axis=1, keepdims=True)
    lse = m + jnp.log(jnp.sum(jnp.exp(x - m), axis=1, keepdims=True))

    # Select target logit / target class weight with one iota==target mask
    # (no gather).  Out-of-range targets select nothing -> zero weight & loss.
    cls = jax.lax.broadcasted_iota(jnp.int32, x.shape, 1)
    sel = cls == t
    x_t = jnp.sum(jnp.where(sel, x, 0.0), axis=1, keepdims=True)
    nll = lse - x_t

    if has_weights:
        w = w_ref[...].astype(jnp.float32)
        w_t = jnp.sum(jnp.where(sel, w, 0.0), axis=1, keepdims=True)
        loss_ref[...] = w_t * nll
        if want_w:
            wout_ref[...] = w_t
    else:
        loss_ref[...] = nll


def _ce_streamed_kernel(*refs, n_classes, tile_c, has_weights, want_w, ragged_c):
    """(M, C) rows layout with the class axis streamed (online logsumexp).

    grid = (batch blocks ["parallel"], class blocks ["arbitrary", innermost]).
    Running per-row max / sum-exp / target-logit / target-weight live in VMEM
    scratch; the per-element loss is written once at the last class block.
    """
    it = iter(refs)
    x_ref = next(it)
    t_ref = next(it)
    w_ref = next(it) if has_weights else None
    loss_ref = next(it)
    wout_ref = next(it) if want_w else None
    m_run = next(it)
    l_run = next(it)
    xt_run = next(it)
    wt_run = next(it) if has_weights else None

    j = pl.program_id(1)

    x = x_ref[...].astype(jnp.float32)                          # (tile_m, tile_c)
    t = t_ref[...]                                              # (tile_m, 1)
    col = j * tile_c + jax.lax.broadcasted_iota(jnp.int32, x.shape, 1)
    if ragged_c:
        # Only the last class block is ragged; exp(-inf) == 0 keeps it exact.
        x = jnp.where(col < n_classes, x, -jnp.inf)
    sel = col == t

    @pl.when(j == 0)
    def _():
        m_run[...] = jnp.full_like(m_run, -jnp.inf)
        l_run[...] = jnp.zeros_like(l_run)
        xt_run[...] = jnp.zeros_like(xt_run)
        if has_weights:
            wt_run[...] = jnp.zeros_like(wt_run)

    m_prev = m_run[...]
    m_new = jnp.maximum(m_prev, jnp.max(x, axis=1, keepdims=True))
    alpha = jnp.exp(m_prev - m_new)
    l_run[...] = l_run[...] * alpha + jnp.sum(jnp.exp(x - m_new), axis=1,
                                              keepdims=True)
    m_run[...] = m_new
    xt_run[...] = xt_run[...] + jnp.sum(jnp.where(sel, x, 0.0), axis=1,
                                        keepdims=True)
    if has_weights:
        w = w_ref[...].astype(jnp.float32)                      # (1, tile_c)
        wt_run[...] = wt_run[...] + jnp.sum(jnp.where(sel, w, 0.0), axis=1,
                                            keepdims=True)

    @pl.when(j == pl.num_programs(1) - 1)
    def _():
        nll = (m_run[...] + jnp.log(l_run[...])) - xt_run[...]
        if has_weights:
            loss_ref[...] = wt_run[...] * nll
            if want_w:
                wout_ref[...] = wt_run[...]
        else:
            loss_ref[...] = nll


# ---------------------------------------------------------------------------
# Byte-based tile sizing
# ---------------------------------------------------------------------------
def _pick_rows_tiles(M, C, itemsize, has_weights, want_w, budget):
    """Tile sizes for the (M, C) rows layout, sized from VMEM bytes.

    Every (tile_m, 1) auxiliary block (targets / per-row outputs / scratch) is
    lane-padded to 128 in VMEM, and pipelined blocks are double-buffered, so
    the per-row VMEM cost is accounted for explicitly.
    """
    fixed = 2 * _LANE * 4             # targets (int32), double-buffered
    fixed += 2 * _LANE * 4            # per-row loss output (f32), double-buffered
    if want_w:
        fixed += 2 * _LANE * 4        # per-row target-weight output
    cap_m = M if M <= _SUB else min(_round_up(M, _SUB), 2048)

    # Preferred: whole class axis resident in one block.
    per_row = fixed + 2 * _round_up(C, _LANE) * itemsize
    fit_m = _round_down(budget // per_row, _SUB)
    if fit_m >= cap_m or fit_m >= 256:
        return max(1, min(fit_m, cap_m)), C, False

    # Large C: stream the class axis so VMEM use is independent of C.
    fixed += (4 if has_weights else 3) * _LANE * 4   # single-buffered scratch
    tile_m = cap_m if M <= _SUB else max(_SUB, min(cap_m, 512))
    avail = max(budget // tile_m - fixed, 2 * _LANE * itemsize)
    tile_c = _round_down(avail // (2 * itemsize), _LANE)
    tile_c = max(_LANE, min(tile_c, _round_up(C, _LANE)))
    if tile_c >= C:
        return tile_m, C, False
    return tile_m, tile_c, True


def _pick_spatial_tile(S, C, itemsize, want_w, budget):
    """Spatial tile for the (N, C, S) layout; None if C is too big for it."""
    per_pos = 2 * _round_up(C, _SUB) * itemsize      # logits, double-buffered
    per_pos += 2 * _SUB * 4                          # targets (int32)
    per_pos += 2 * _SUB * 4                          # per-position loss (f32)
    if want_w:
        per_pos += 2 * _SUB * 4
    fit_s = _round_down(budget // per_pos, _LANE)
    if fit_s < _LANE:
        return None                                  # huge C -> streamed rows path
    if S <= _LANE:
        return S
    return min(fit_s, min(_round_up(S, _LANE), 32768))


# ---------------------------------------------------------------------------
# pallas_call drivers
# ---------------------------------------------------------------------------
def _rows_forward(x2, t1, w, has_weights, want_w, budget, vmem_limit,
                  tile_override=None):
    M, C = x2.shape
    itemsize = x2.dtype.itemsize
    if tile_override is not None:
        tile_m, tile_c = tile_override
        streamed = tile_c < C
    else:
        tile_m, tile_c, streamed = _pick_rows_tiles(M, C, itemsize, has_weights,
                                                    want_w, budget)

    args = [x2, t1.reshape(M, 1).astype(jnp.int32)]
    if has_weights:
        args.append(w.reshape(1, C))

    out_shapes = [jax.ShapeDtypeStruct((M, 1), jnp.float32)]
    if want_w:
        out_shapes.append(jax.ShapeDtypeStruct((M, 1), jnp.float32))

    gm = pl.cdiv(M, tile_m)
    if not streamed:
        grid = (gm,)
        in_specs = [pl.BlockSpec((tile_m, C), lambda i: (i, 0)),
                    pl.BlockSpec((tile_m, 1), lambda i: (i, 0))]
        if has_weights:
            in_specs.append(pl.BlockSpec((1, C), lambda i: (0, 0)))
        out_spec = pl.BlockSpec((tile_m, 1), lambda i: (i, 0))
        scratch = []
        dims = ("parallel",)
        kernel = functools.partial(_ce_resident_kernel,
                                   has_weights=has_weights, want_w=want_w)
    else:
        grid = (gm, pl.cdiv(C, tile_c))
        in_specs = [pl.BlockSpec((tile_m, tile_c), lambda i, j: (i, j)),
                    pl.BlockSpec((tile_m, 1), lambda i, j: (i, 0))]
        if has_weights:
            in_specs.append(pl.BlockSpec((1, tile_c), lambda i, j: (0, j)))
        out_spec = pl.BlockSpec((tile_m, 1), lambda i, j: (i, 0))
        scratch = [pltpu.VMEM((tile_m, 1), jnp.float32)
                   for _ in range(4 if has_weights else 3)]
        dims = ("parallel", "arbitrary")
        kernel = functools.partial(_ce_streamed_kernel, n_classes=C,
                                   tile_c=tile_c, has_weights=has_weights,
                                   want_w=want_w, ragged_c=(C % tile_c != 0))

    outs = pl.pallas_call(
        kernel,
        out_shape=out_shapes,
        grid_spec=pltpu.PrefetchScalarGridSpec(
            num_scalar_prefetch=0,
            grid=grid,
            in_specs=in_specs,
            out_specs=[out_spec] * len(out_shapes),
            scratch_shapes=scratch),
        compiler_params=pltpu.CompilerParams(dimension_semantics=dims,
                                             vmem_limit_bytes=vmem_limit),
    )(*args)

    loss = outs[0][:, 0]
    w_el = outs[1][:, 0] if want_w else None
    return loss, w_el


def _nchw_forward(x3, targets, w, has_weights, want_w, tile_s, vmem_limit):
    N, C, S = x3.shape
    args = [x3, targets.reshape(N, 1, S).astype(jnp.int32)]
    if has_weights:
        args.append(w.reshape(1, C, 1))

    out_shapes = [jax.ShapeDtypeStruct((N, 1, S), jnp.float32)]
    if want_w:
        out_shapes.append(jax.ShapeDtypeStruct((N, 1, S), jnp.float32))

    grid = (N, pl.cdiv(S, tile_s))
    in_specs = [pl.BlockSpec((1, C, tile_s), lambda n, s: (n, 0, s)),
                pl.BlockSpec((1, 1, tile_s), lambda n, s: (n, 0, s))]
    if has_weights:
        in_specs.append(pl.BlockSpec((1, C, 1), lambda n, s: (0, 0, 0)))
    out_spec = pl.BlockSpec((1, 1, tile_s), lambda n, s: (n, 0, s))

    kernel = functools.partial(_ce_resident_kernel,
                               has_weights=has_weights, want_w=want_w)
    outs = pl.pallas_call(
        kernel,
        out_shape=out_shapes,
        grid_spec=pltpu.PrefetchScalarGridSpec(
            num_scalar_prefetch=0,
            grid=grid,
            in_specs=in_specs,
            out_specs=[out_spec] * len(out_shapes),
            scratch_shapes=[]),
        compiler_params=pltpu.CompilerParams(
            dimension_semantics=("parallel", "parallel"),
            vmem_limit_bytes=vmem_limit),
    )(*args)

    loss = outs[0][:, 0, :]
    w_el = outs[1][:, 0, :] if want_w else None
    return loss, w_el


# ---------------------------------------------------------------------------
# Public wrapper (== WeightedCrossEntropyLoss.forward)
# ---------------------------------------------------------------------------
def weighted_cross_entropy_loss(inputs, targets, weights=None, reduction='mean',
                                *, _tile_override=None):
    """JAX/Pallas equivalent of WeightedCrossEntropyLoss(weights, reduction).

    inputs : (N, C) or (N, C, d1, ..., dk) logits (f32 / bf16 / ...)
    targets: (N,)   or (N, d1, ..., dk)   integer class indices in [0, C)
    weights: optional (C,) per-class weights
    Returns the loss in the input dtype (scalar for 'mean'/'sum').
    """
    if reduction not in ('mean', 'sum', 'none'):
        raise ValueError(f"unsupported reduction: {reduction!r}")
    has_weights = weights is not None
    want_w = has_weights and reduction == 'mean'
    out_dtype = inputs.dtype
    w = jnp.asarray(weights, jnp.float32) if has_weights else None

    cap = _vmem_capacity_bytes()
    budget = int(cap * 0.40)       # VMEM earmarked for pipelined blocks + scratch
    vmem_limit = int(cap * 0.70)   # raise the scoped-VMEM default accordingly

    if inputs.ndim > 2:
        N, C = inputs.shape[0], inputs.shape[1]
        spatial = inputs.shape[2:]
        S = math.prod(spatial)
        tile_s = None if _tile_override is not None else _pick_spatial_tile(
            S, C, inputs.dtype.itemsize, want_w, budget)
        if tile_s is not None:
            # Native NC* layout: no transpose, classes on sublanes, spatial
            # positions lane-dense.
            loss_el, w_el = _nchw_forward(inputs.reshape(N, C, S), targets, w,
                                          has_weights, want_w, tile_s, vmem_limit)
        else:
            # Huge class axis: fall back to flattened (streamed-class) layout.
            x2 = jnp.moveaxis(inputs, 1, -1).reshape(-1, C)
            loss_el, w_el = _rows_forward(x2, targets.reshape(-1), w, has_weights,
                                          want_w, budget, vmem_limit,
                                          tile_override=_tile_override)
        n_el = N * S
        loss_shape = (N,) + spatial
    else:
        M, C = inputs.shape
        loss_el, w_el = _rows_forward(inputs, targets.reshape(-1), w, has_weights,
                                      want_w, budget, vmem_limit,
                                      tile_override=_tile_override)
        n_el = M
        loss_shape = (M,)

    if reduction == 'none':
        return loss_el.reshape(loss_shape).astype(out_dtype)

    loss_sum = jnp.sum(loss_el, dtype=jnp.float32)
    if reduction == 'sum':
        return loss_sum.astype(out_dtype)
    # 'mean': PyTorch divides by sum of selected class weights (or the count).
    denom = jnp.sum(w_el, dtype=jnp.float32) if has_weights else jnp.float32(n_el)
    return (loss_sum / denom).astype(out_dtype)


# ---------------------------------------------------------------------------
# Pure-JAX reference (matches F.cross_entropy semantics used by the module)
# ---------------------------------------------------------------------------
def _reference(inputs, targets, weights=None, reduction='mean'):
    C = inputs.shape[1] if inputs.ndim > 2 else inputs.shape[-1]
    if inputs.ndim > 2:
        x = jnp.moveaxis(inputs, 1, -1).reshape(-1, C)
        t = targets.reshape(-1)
    else:
        x = inputs
        t = targets.reshape(-1)
    logp = jax.nn.log_softmax(x.astype(jnp.float32), axis=-1)
    wv = jnp.ones((C,), jnp.float32) if weights is None else jnp.asarray(
        weights, jnp.float32)
    t = t.astype(jnp.int32)
    lp_t = jnp.take_along_axis(logp, t[:, None], axis=-1)[:, 0]
    w_t = wv[t]
    loss = -w_t * lp_t
    if reduction == 'mean':
        return loss.sum() / w_t.sum()
    if reduction == 'sum':
        return loss.sum()
    return loss.reshape(targets.shape)


if __name__ == "__main__":
    key = jax.random.PRNGKey(0)
    ks = jax.random.split(key, 8)

    # Case 1: segmentation-style NCHW input, class weights, 'mean' (module default).
    x4 = jax.random.normal(ks[0], (2, 4, 16, 16), dtype=jnp.float32)
    t4 = jax.random.randint(ks[1], (2, 16, 16), 0, 4, dtype=jnp.int32)
    w4 = jax.random.uniform(ks[2], (4,), minval=0.5, maxval=2.0, dtype=jnp.float32)
    out = jax.block_until_ready(weighted_cross_entropy_loss(x4, t4, w4, 'mean'))
    ref = _reference(x4, t4, w4, 'mean')
    assert jnp.allclose(out.astype(jnp.float32), ref, atol=1e-5, rtol=1e-5), (out, ref)

    # Case 2: NCHW, unweighted, reduction='none' (lane-dense per-pixel output).
    out = jax.block_until_ready(weighted_cross_entropy_loss(x4, t4, None, 'none'))
    ref = _reference(x4, t4, None, 'none')
    assert out.shape == ref.shape
    assert jnp.allclose(out.astype(jnp.float32), ref, atol=1e-5, rtol=1e-5)

    # Case 3: plain (N, C) logits, weighted 'mean' (rows layout, no transpose).
    x2 = jax.random.normal(ks[3], (16, 8), dtype=jnp.float32)
    t2 = jax.random.randint(ks[4], (16,), 0, 8, dtype=jnp.int32)
    w2 = jax.random.uniform(ks[5], (8,), minval=0.5, maxval=2.0, dtype=jnp.float32)
    out = jax.block_until_ready(weighted_cross_entropy_loss(x2, t2, w2, 'mean'))
    ref = _reference(x2, t2, w2, 'mean')
    assert jnp.allclose(out.astype(jnp.float32), ref, atol=1e-5, rtol=1e-5), (out, ref)

    # Case 4: bf16 logits, ragged batch (no pad emitted), reduction='sum'.
    x3 = jax.random.normal(ks[6], (270, 5), dtype=jnp.bfloat16)
    t3 = jax.random.randint(ks[7], (270,), 0, 5, dtype=jnp.int32)
    out = jax.block_until_ready(weighted_cross_entropy_loss(x3, t3, None, 'sum'))
    ref = _reference(x3, t3, None, 'sum')
    assert jnp.allclose(out.astype(jnp.float32), ref, rtol=2e-2), (out, ref)

    # Case 5: forced class-axis streaming (online logsumexp, ragged class tail).
    xs = jax.random.normal(ks[0], (64, 320), dtype=jnp.float32)
    ts = jax.random.randint(ks[1], (64,), 0, 320, dtype=jnp.int32)
    ws = jax.random.uniform(ks[2], (320,), minval=0.5, maxval=2.0, dtype=jnp.float32)
    out = jax.block_until_ready(
        weighted_cross_entropy_loss(xs, ts, ws, 'mean', _tile_override=(64, 128)))
    ref = _reference(xs, ts, ws, 'mean')
    assert jnp.allclose(out.astype(jnp.float32), ref, atol=1e-5, rtol=1e-5), (out, ref)

    print("KERNEL_OK")
</pallas_src>

<mosaic_0001>
module attributes {stable_mosaic.version = 11 : i64} {
  func.func @_ce_resident_kernel(%arg0: i32, %arg1: i32, %arg2: memref<1x4x256xf32, #tpu.memory_space<vmem>>, %arg3: memref<1x1x256xi32, #tpu.memory_space<vmem>>, %arg4: memref<1x4x1xf32, #tpu.memory_space<vmem>>, %arg5: memref<1x1x256xf32, #tpu.memory_space<vmem>>, %arg6: memref<1x1x256xf32, #tpu.memory_space<vmem>>) attributes {dimension_semantics = [#tpu.dimension_semantics<parallel>, #tpu.dimension_semantics<parallel>], iteration_bounds = array<i64: 2, 1>, scalar_prefetch = 0 : i64, scratch_operands = 0 : i64, tpu.core_type = #tpu.core_type<tc>, window_params = [{transform_indices = @transform_0, window_bounds = array<i64: 1, 4, 256>}, {transform_indices = @transform_1, window_bounds = array<i64: 1, 1, 256>}, {pipeline_mode = #tpu.pipeline_mode<synchronous>, transform_indices = @transform_2, window_bounds = array<i64: 1, 4, 1>}, {transform_indices = @transform_3, window_bounds = array<i64: 1, 1, 256>}, {transform_indices = @transform_4, window_bounds = array<i64: 1, 1, 256>}]} {
    %c0 = arith.constant 0 : index
    %c0_0 = arith.constant 0 : index
    %c0_1 = arith.constant 0 : index
    %0 = vector.load %arg2[%c0, %c0_0, %c0_1] : memref<1x4x256xf32, #tpu.memory_space<vmem>>, vector<1x4x256xf32>
    %c0_2 = arith.constant 0 : index
    %c0_3 = arith.constant 0 : index
    %c0_4 = arith.constant 0 : index
    %1 = vector.load %arg3[%c0_2, %c0_3, %c0_4] : memref<1x1x256xi32, #tpu.memory_space<vmem>>, vector<1x1x256xi32>
    %cst = arith.constant dense<0xFF800000> : vector<1x256xf32>
    %2 = vector.multi_reduction <maximumf>, %0, %cst [1] : vector<1x4x256xf32> to vector<1x256xf32>
    %3 = vector.shape_cast %2 : vector<1x256xf32> to vector<1x1x256xf32>
    %4 = vector.broadcast %3 : vector<1x1x256xf32> to vector<1x4x256xf32>
    %5 = arith.subf %0, %4 : vector<1x4x256xf32>
    %6 = math.exp %5 : vector<1x4x256xf32>
    %cst_5 = arith.constant dense<0.000000e+00> : vector<1x256xf32>
    %7 = vector.multi_reduction <add>, %6, %cst_5 [1] : vector<1x4x256xf32> to vector<1x256xf32>
    %8 = vector.shape_cast %7 : vector<1x256xf32> to vector<1x1x256xf32>
    %9 = math.log %8 : vector<1x1x256xf32>
    %10 = arith.addf %3, %9 : vector<1x1x256xf32>
    %11 = tpu.iota {dimensions = array<i32: 1>} : vector<1x4x256xi32>
    %12 = vector.broadcast %1 : vector<1x1x256xi32> to vector<1x4x256xi32>
    %13 = arith.cmpi eq, %11, %12 : vector<1x4x256xi32>
    %cst_6 = arith.constant 0.000000e+00 : f32
    %14 = vector.broadcast %cst_6 : f32 to vector<1x4x256xf32>
    %15 = arith.select %13, %0, %14 : vector<1x4x256xi1>, vector<1x4x256xf32>
    %cst_7 = arith.constant dense<0.000000e+00> : vector<1x256xf32>
    %16 = vector.multi_reduction <add>, %15, %cst_7 [1] : vector<1x4x256xf32> to vector<1x256xf32>
    %17 = vector.shape_cast %16 : vector<1x256xf32> to vector<1x1x256xf32>
    %18 = arith.subf %10, %17 : vector<1x1x256xf32>
    %c0_8 = arith.constant 0 : index
    %c0_9 = arith.constant 0 : index
    %c0_10 = arith.constant 0 : index
    %19 = vector.load %arg4[%c0_8, %c0_9, %c0_10] : memref<1x4x1xf32, #tpu.memory_space<vmem>>, vector<1x4x1xf32>
    %cst_11 = arith.constant 0.000000e+00 : f32
    %20 = vector.shape_cast %19 : vector<1x4x1xf32> to vector<1x4x1xf32>
    %21 = vector.broadcast %20 : vector<1x4x1xf32> to vector<1x4x256xf32>
    %22 = vector.broadcast %cst_11 : f32 to vector<1x4x256xf32>
    %23 = arith.select %13, %21, %22 : vector<1x4x256xi1>, vector<1x4x256xf32>
    %cst_12 = arith.constant dense<0.000000e+00> : vector<1x256xf32>
    %24 = vector.multi_reduction <add>, %23, %cst_12 [1] : vector<1x4x256xf32> to vector<1x256xf32>
    %25 = vector.shape_cast %24 : vector<1x256xf32> to vector<1x1x256xf32>
    %26 = arith.mulf %25, %18 : vector<1x1x256xf32>
    %c0_13 = arith.constant 0 : index
    %c0_14 = arith.constant 0 : index
    %c0_15 = arith.constant 0 : index
    %27 = vector.load %arg5[%c0_13, %c0_14, %c0_15] : memref<1x1x256xf32, #tpu.memory_space<vmem>>, vector<1x1x256xf32>
    tpu.vector_store %arg5[%c0_13, %c0_14, %c0_15], %26 {strides = array<i32>} : memref<1x1x256xf32, #tpu.memory_space<vmem>>, vector<1x1x256xf32>,
    %c0_16 = arith.constant 0 : index
    %c0_17 = arith.constant 0 : index
    %c0_18 = arith.constant 0 : index
    %28 = vector.load %arg6[%c0_16, %c0_17, %c0_18] : memref<1x1x256xf32, #tpu.memory_space<vmem>>, vector<1x1x256xf32>
    tpu.vector_store %arg6[%c0_16, %c0_17, %c0_18], %25 {strides = array<i32>} : memref<1x1x256xf32, #tpu.memory_space<vmem>>, vector<1x1x256xf32>,
    return
  }
  func.func @transform_0(%arg0: i32, %arg1: i32) -> (i32, i32, i32) {
    %c0_i32 = arith.constant 0 : i32
    %c0_i32_0 = arith.constant 0 : i32
    return %arg0, %c0_i32, %arg1 : i32, i32, i32
  }
  func.func @transform_1(%arg0: i32, %arg1: i32) -> (i32, i32, i32) {
    %c0_i32 = arith.constant 0 : i32
    %c0_i32_0 = arith.constant 0 : i32
    return %arg0, %c0_i32, %arg1 : i32, i32, i32
  }
  func.func @transform_2(%arg0: i32, %arg1: i32) -> (i32, i32, i32) {
    %c0_i32 = arith.constant 0 : i32
    %c0_i32_0 = arith.constant 0 : i32
    %c0_i32_1 = arith.constant 0 : i32
    %c0_i32_2 = arith.constant 0 : i32
    return %c0_i32, %c0_i32_0, %c0_i32_1 : i32, i32, i32
  }
  func.func @transform_3(%arg0: i32, %arg1: i32) -> (i32, i32, i32) {
    %c0_i32 = arith.constant 0 : i32
    %c0_i32_0 = arith.constant 0 : i32
    return %arg0, %c0_i32, %arg1 : i32, i32, i32
  }
  func.func @transform_4(%arg0: i32, %arg1: i32) -> (i32, i32, i32) {
    %c0_i32 = arith.constant 0 : i32
    %c0_i32_0 = arith.constant 0 : i32
    return %arg0, %c0_i32, %arg1 : i32, i32, i32
  }
}

</mosaic_0001>

<bundles_post_ra>
// kernel: tpu_custom_call.1
= control target key start
LH: loop header
LB: loop body
LE: loop exit
PB: predicated region body
PF: predicated region fallthrough
CT: control target
= control target key end

     0   :  { %10 = vsyncpa [#allocation3], 0  ;;  %s1097_s0 = inlined_call_operand.hbm [shape: f32[2,4,256], index: 0, kind: input, shape index: {}]   ;;  %s1098_s1 = inlined_call_operand.vmem [shape: s32[2,1,256], index: 1, kind: input, shape index: {}]   ;;  %s1099_s2 = inlined_call_operand.vmem [shape: f32[1,4,1], index: 2, kind: input, shape index: {}]   ;;  %s1100_s3 = inlined_call_operand.hbm [shape: f32[2,1,256], index: 3, kind: output, shape index: {0}]   ;;  %s1101_s4 = inlined_call_operand.hbm [shape: f32[2,1,256], index: 4, kind: output, shape index: {1}]  }
   0x1   :  { %12 = vsyncpa [#allocation3 + $0x1], 0 }
   0x2   :  { %13 = vsyncpa [#allocation4], 0 }
   0x3   :  { %15 = vsyncpa [#allocation4 + $0x1], 0 }
   0x4   :  { %16 = vsyncpa [#allocation7], 0 }
   0x5   :  { %18 = vsyncpa [#allocation7 + $0x1], 0  ;;  %s869_s15 = smov 0   ;;  %s871_s16 = smov 0  }
   0x6   :  { %s873_s17 = smov 0   ;;  %s875_s18 = smov 0  }
   0x7   :  { %s877_s19 = smov 0   ;;  %s879_s20 = smov 0  }
   0x8 LB: > { %s599_s21 = sadd.s32 4294967295, %s837_s20   ;;  %s600_s22 = sadd.s32 4294967294, %s837_s20   ;;  %s837_s20 = sphi %s879_s20, %s24_s20   ;;  %s833_s19 = sphi %s877_s19, %s1115_s19   ;;  %s829_s18 = sphi %s875_s18, %s1114_s18   ;;  %s825_s17 = sphi %s873_s17, %s1113_s17   ;;  %s821_s16 = sphi %s871_s16, %s1112_s16   ;;  %s817_s15 = sphi %s869_s15, %s1111_s15  }
   0x9   : > { %s36_s23 = sadd.s32 1, %s833_s19  ;;  %s45_s24 = sadd.s32 1, %s825_s17 }
   0xa   : > { %p38_p0 = scmp.ge.s32.totalorder %s36_s23, 2  ;;  %p52_p1 = scmp.ne.s32.totalorder %s825_s17, %s821_s16 }
   0xb   : > { %p53_p2 = scmp.eq.s32.totalorder %s837_s20, 0  ;;  %p58_p3 = scmp.ne.s32.totalorder %s821_s16, %s817_s15 }
   0xc   : > { %s1117_s23 = smov (%p38_p0, %s36_s23), 0  ;;  %p59_p5 = scmp.eq.s32.totalorder %s599_s21, 0 }
   0xd   : > { %p910_p4 = por %p53_p2, %p52_p1  ;;  %s40_s26 = ssub.s32 %s833_s19, %s1117_s23 }
   0xe   : > { %p133_p6 = scmp.eq.s32.totalorder %s599_s21, 1  ;;  %p43_p7 = scmp.eq.s32.totalorder %s40_s26, 0 }
   0xf   : > { %p916_p8 = por %p59_p5, %p58_p3  ;;  %p139_p10 = scmp.eq.s32.totalorder %s600_s22, 1 }
  0x10   : > { %p920_p9 = por %p133_p6, %p52_p1  ;;  %p639_p13 = scmp.lt.s32.totalorder %s837_s20, 2 }
  0x11   : > { %s925_s29 = scalar_select %p43_p7, %s825_s17, %s45_s24  }
  0x12   : > { %p927_p11 = por %p139_p10, %p58_p3  ;;  %s190_s5 = sand.u32 1, %s825_s17  }
  0x13   : > { %s603_s6 = sshll.u32 %s190_s5, 3  ;;  %s619_s7 = sshll.u32 %s833_s19, 7 }
  0x14   : > { %s1105_s30 = scalar_select %p927_p11, 1, 0 }
  0x15   : > { %s202_s10 = scalar_lea.hbm %s1097_s0, %s619_s7  ;;  %s194_s11 = scalar_lea.vmem [#allocation2], %s603_s6 }
  0x16   : > { %s204_s12 = sshll.u32 %s194_s11, 4  ;;  %p940_p0 = pnand %p639_p13, %p910_p4  ;;  %s205_s12 = int_to_ptr.vmem [resolvable:$true] %s204_s12 }
  0x17   : > { %p606_p1 = scmp.ge.s32.totalorder %s837_s20, 1  ;;  %p221_p2 = scmp.lt.s32.totalorder %s837_s20, 3 }
  0x18   : > { %s191_s14 = scalar_lea.sflag [#allocation3], %s190_s5  ;;  %p701_p3 = pneg %p940_p0 }
  0x19   : > { %s712_s21 = scalar_lea.vmem %s205_s12, 128  ;;  %s839_s22 = smov [#allocation2]  }
  0x1a   : > { %p713_p5 = scmp.ne.s32.totalorder %s205_s12, %s712_s21  ;;  %s717_s24 = sshll.u32 %s839_s22, 4  ;;  %s718_s24 = int_to_ptr.vmem [resolvable:$false] %s717_s24 }
  0x1b   : > { %s719_s26 = scalar_lea.vmem %s718_s24, 256  ;;  %p720_p10 = scmp.lt.s32.totalorder %s205_s12, %s718_s24 }
  0x1c   : > { %p715_p6 = pnand %p713_p5, %p701_p3  ;;  %p721_p12 = scmp.lt.s32.totalorder %s719_s26, %s712_s21 }
  0x1e   : > { %p716_p7 = pneg %p715_p6  ;;  %p722_p4 = por %p721_p12, %p720_p10 }
  0x20   : > { %p723_p13 = pnand %p722_p4, %p716_p7 }
  0x22   : > { %726 = shalt.err (!%p723_p13)
}
  0x23   : > { %631 = dma.hbm_to_vmem [thread:$0]  (!%p940_p0), %s202_s10, 128, %s205_s12, %s191_s14  }
  0x24   : > { %p222_p11 = pnand %p606_p1, %p221_p2 }
  0x25   : > { %s955_s25 = sand.u32 (!%p222_p11), 1, %s821_s16  }
  0x26   : > { %225 = sbr.rel (%p222_p11) target bundleno = 225 (0xe1), region = 32  ;;  %s607_s5 = sshll.u32 (!%p222_p11), %s955_s25, 3 }
  0x27   : > { %s228_s6 = scalar_lea.sflag (!%p222_p11), [#allocation3], %s955_s25  ;;  %s231_s7 = scalar_lea.vmem (!%p222_p11), [#allocation2], %s607_s5 }
  0x2b   : > { %804 = dma.done.wait (%p916_p8), %s228_s6, 128  }
  0x2c   : > { %806 = vsyncadd (%p916_p8), %s228_s6, 4294967168  ;;  %v840_v0 = vmov 0   ;;  %v361_v1 = vld [vmem:[%s1099_s2] sm:$0xf]  ;;  %vm286_vm0 = vcmask 1043456   ;;  %p271_p8 = scmp.lt.s32.totalorder %s829_s18, 1  ;;  %v331_v25 = vlaneseq }
  0x2d   : > { %691 = vset.pattern.permute.xlu0 %v840_v0  ;;  %v281_v2 = vld [vmem:[%s231_s7] sm:$0xff]  ;;  %s608_s14 = sshll.u32 %s955_s25, 1  ;;  %s620_s21 = sshll.u32 %s829_s18, 5 }
  0x2e   : > { %364 = vperm.xlu0 %691, %v361_v1   ;;  %v284_v3 = vcombine.high %v281_v2, %v281_v2  ;;  %v287_v4 = vsel %vm286_vm0, %v281_v2, -inf  ;;  %s272_s27 = scalar_select %p271_p8, %s829_s18, 1  ;;  %v979_v28 = vshrl.u32 %v331_v25, 7  ;;  %vm1006_vm3 = vcmp.lt.s32.totalorder %v331_v25, 256 }
  0x2f   : > { %v288_v6 = vrot.slane %v287_v4, 4  ;;  %s268_s22 = scalar_lea.vmem [#allocation6], %s608_s14  ;;  %s1010_s26 = scalar_lea.vmem [#allocation5], %s608_s14 }
  0x30   : > { %v294_v5 = vsel %vm286_vm0, %v284_v3, -inf  ;;  %s610_s10 = sshll.u32 %s272_s27, 1  ;;  %v335_v31 = vsub.s32 0, %v979_v28  ;;  %v339_v32 = vsub.s32 1, %v979_v28  ;;  %s465_s24 = sshll.u32 %s268_s22, 4  ;;  %s1018_s24 = int_to_ptr.vmem [resolvable:$true] %s465_s24 }
  0x31   : > { %v295_v7 = vrot.slane %v294_v5, 4  ;;  %v289_v8 = vmax.f32 %v287_v4, %v288_v6  ;;  %s277_s13 = scalar_lea.vmem %s1098_s1, %s610_s10  ;;  %s449_s5 = sshll.u32 %s1010_s26, 4  ;;  %s1025_s5 = int_to_ptr.vmem [resolvable:$true] %s449_s5 }
  0x32   : > { %v282_v33 = vld [vmem:[%s277_s13] sm:$0x3]  ;;  %s1016_s18 = scalar_lea.hbm %s1101_s4, %s620_s21  ;;  %s1023_s27 = scalar_lea.hbm %s1100_s3, %s620_s21 }
  0x33   : > { %v296_v9 = vmax.f32 %v294_v5, %v295_v7  ;;  %v290_v10 = vrot.slane %v289_v8, 2  ;;  %v336_v36 = vrot.slane %v282_v33, %v335_v31  ;;  %v340_v37 = vrot.slane %v282_v33, %v339_v32  ;;  %s433_s10 = scalar_lea.sflag [#allocation7], %s955_s25  ;;  %s727_s11 = scalar_lea.vmem %s1018_s24, 32 }
  0x34   : > { %v841_v5 = vmov 1966171168   ;;  %p728_p11 = scmp.ne.s32.totalorder %s1018_s24, %s727_s11  ;;  %s842_s12 = smov [#allocation6]  }
  0x35   : > { %v297_v11 = vrot.slane %v296_v9, 2  ;;  %v291_v12 = vmax.f32 %v289_v8, %v290_v10  ;;  %vm341_vm1 = vcmp.eq.s32.totalorder %v979_v28, %v336_v36  ;;  %vm342_vm2 = vcmp.eq.s32.totalorder %v979_v28, %v340_v37  ;;  %s731_s13 = sshll.u32 %s842_s12, 4  ;;  %s732_s13 = int_to_ptr.vmem [resolvable:$false] %s731_s13 }
  0x36   : > { %v343_v42 = vsel %vm341_vm1, %v281_v2, 0.0  ;;  %v344_v43 = vsel %vm342_vm2, %v284_v3, 0.0  ;;  %v389_v6 = vunpack.c.l.s4 %v841_v5  ;;  %p729_p12 = pnand %p728_p11, %p920_p9  ;;  %s733_s14 = scalar_lea.vmem %s732_s13, 64 }
  0x37   : > { %v298_v13 = vmax.f32 %v296_v9, %v297_v11  ;;  %v292_v14 = vrot.slane %v291_v12, 1  ;;  %v345_v46 = vsel %vm286_vm0, %v343_v42, 0.0  ;;  %v352_v47 = vsel %vm286_vm0, %v344_v43, 0.0  ;;  %p734_p1 = scmp.lt.s32.totalorder %s1018_s24, %s732_s13  ;;  %p735_p2 = scmp.lt.s32.totalorder %s733_s14, %s727_s11 }
  0x38   : > { %v346_v48 = vrot.slane %v345_v46, 4  ;;  %v353_v49 = vrot.slane %v352_v47, 4  ;;  %p730_p0 = pneg %p729_p12 }
  0x39   : > { %v299_v15 = vrot.slane %v298_v13, 1  ;;  %v968_v16 = vmax.f32 %v291_v12, %v292_v14  ;;  %p736_p3 = por %p735_p2, %p734_p1 }
  0x3a   : > { %v347_v50 = vadd.f32 %v346_v48, %v345_v46  ;;  %v354_v51 = vadd.f32 %v353_v49, %v352_v47 }
  0x3b   : > { %v970_v17 = vmax.f32 %v298_v13, %v299_v15  ;;  %v390_v15 = vunpack.c.0.s8 %v389_v6  ;;  %p737_p5 = pnand %p736_p3, %p730_p0 }
  0x3c   : > { %v348_v52 = vrot.slane %v347_v50, 2  ;;  %v355_v53 = vrot.slane %v354_v51, 2 }
  0x3d   : > { %v303_v18 = vcombine.low %v968_v16, %v970_v17 }
  0x3e   : > { %v349_v54 = vadd.f32 %v348_v52, %v347_v50  ;;  %v356_v55 = vadd.f32 %v355_v53, %v354_v51 }
  0x3f   : > { %v305_v19 = vsub.f32 %v281_v2, %v303_v18 }
  0x40   : > { %v350_v61 = vrot.slane %v349_v54, 1  ;;  %v357_v62 = vrot.slane %v356_v55, 1 }
  0x41   : > { %v306_v20 = vmul.f32 1.442695, %v305_v19 }
  0x42   : > { %v351_v9 = vadd.f32 %v350_v61, %v349_v54  ;;  %v358_v10 = vadd.f32 %v357_v62, %v356_v55 }
  0x43   : > { %693 = vpow2.f32 %v306_v20 }
  0x50   : > { %v694_v21 = vpop.eup %693 }
  0x51   : > { %v309_v22 = vcombine.high %v694_v21, %v694_v21  ;;  %v311_v23 = vsel %vm286_vm0, %v694_v21, 0.0 }
  0x52   : > { %v312_v26 = vrot.slane %v311_v23, 4 }
  0x53   : > { %v318_v24 = vsel %vm286_vm0, %v309_v22, 0.0 }
  0x54   : > { %v319_v27 = vrot.slane %v318_v24, 4  ;;  %v313_v29 = vadd.f32 %v312_v26, %v311_v23 }
  0x56   : > { %v320_v30 = vadd.f32 %v319_v27, %v318_v24  ;;  %v314_v34 = vrot.slane %v313_v29, 2  ;;  %v393_v24 = vsub.s32 %v390_v15, %v979_v28 }
  0x58   : > { %v321_v35 = vrot.slane %v320_v30, 2  ;;  %v315_v38 = vadd.f32 %v314_v34, %v313_v29 }
  0x5a   : > { %v322_v39 = vadd.f32 %v321_v35, %v320_v30  ;;  %v316_v40 = vrot.slane %v315_v38, 1 }
  0x5c   : > { %v323_v41 = vrot.slane %v322_v39, 1  ;;  %v317_v44 = vadd.f32 %v316_v40, %v315_v38 }
  0x5e   : > { %v324_v45 = vadd.f32 %v323_v41, %v322_v39  ;;  %695 = vlog2.f32 %v317_v44 }
  0x60   : > { %697 = vlog2.f32 %v324_v45 }
  0x6b   : > { %v696_v56 = vpop.eup %695 }
  0x6c   : > { %v326_v1 = vmul.f32 0.6931472, %v696_v56 }
  0x6d   : > { %v698_v57 = vpop.eup %697 }
  0x6e   : > { %v328_v2 = vmul.f32 0.6931472, %v698_v57  ;;  %v329_v11 = vadd.f32 %v326_v1, %v968_v16 }
  0x70   : > { %v330_v12 = vadd.f32 %v328_v2, %v970_v17  ;;  %v359_v20 = vsub.f32 %v329_v11, %v351_v9 }
  0x72   : > { %v360_v21 = vsub.f32 %v330_v12, %v358_v10 }
  0xa9   : > { %v365_v58 = vpop.permute.xlu0 %364 }
  0xaa   : > { %v367_v59 = vsel %vm341_vm1, %v365_v58, 0.0  ;;  %v368_v60 = vsel %vm342_vm2, %v365_v58, 0.0 }
  0xab   : > { %v369_v63 = vsel %vm286_vm0, %v367_v59, 0.0  ;;  %v376_v0 = vsel %vm286_vm0, %v368_v60, 0.0 }
  0xac   : > { %v370_v3 = vrot.slane %v369_v63, 4  ;;  %v377_v4 = vrot.slane %v376_v0, 4 }
  0xae   : > { %v371_v7 = vadd.f32 %v370_v3, %v369_v63  ;;  %v378_v8 = vadd.f32 %v377_v4, %v376_v0 }
  0xb0   : > { %v372_v13 = vrot.slane %v371_v7, 2  ;;  %v379_v14 = vrot.slane %v378_v8, 2 }
  0xb2   : > { %v373_v18 = vadd.f32 %v372_v13, %v371_v7  ;;  %v380_v19 = vadd.f32 %v379_v14, %v378_v8 }
  0xb4   : > { %v374_v22 = vrot.slane %v373_v18, 1  ;;  %v381_v23 = vrot.slane %v380_v19, 1 }
  0xb6   : > { %v375_v26 = vadd.f32 %v374_v22, %v373_v18  ;;  %v382_v27 = vadd.f32 %v381_v23, %v380_v19 }
  0xb8   : > { %v383_v29 = vmul.f32 %v375_v26, %v359_v20  ;;  %v384_v30 = vmul.f32 %v382_v27, %v360_v21  ;;  %v410_v16 = vcombine.low %v375_v26, %v382_v27 }
  0xba   : > { %v387_v17 = vcombine.low %v383_v29, %v384_v30  ;;  %v417_v31 = vrot.slane %v410_v16, %v393_v24 }
  0xbc   : > { %v394_v28 = vrot.slane %v387_v17, %v393_v24  ;;  %v424_v33 = vrot.slane %v417_v31, %v393_v24 }
  0xbe   : > { %v401_v25 = vrot.slane %v394_v28, %v393_v24  ;;  %426 = vst.msk [vmem:[%s268_s22] sm:$0x3] %vm1006_vm3, %v424_v33 }
  0xbf   : > { %740 = shalt.err (!%p737_p5)
}
  0xc0   : > { %s741_s21 = scalar_lea.hbm %s1016_s18, 32  ;;  %s745_s7 = scalar_lea.hbm %s1101_s4, 64 }
  0xc1   : > { %p742_p6 = scmp.ne.s32.totalorder %s1016_s18, %s741_s21  ;;  %p746_p4 = scmp.lt.s32.totalorder %s1016_s18, %s1101_s4 }
  0xc2   : > { %p747_p13 = scmp.lt.s32.totalorder %s745_s7, %s741_s21 }
  0xc3   : > { %p743_p7 = pnand %p742_p6, %p920_p9 }
  0xc4   : > { %p748_p8 = por %p747_p13, %p746_p4 }
  0xc5   : > { %p744_p10 = pneg %p743_p7 }
  0xc7   : > { %p749_p11 = pnand %p748_p8, %p744_p10 }
  0xc9   : > { %752 = shalt.err (!%p749_p11)
}
  0xca   : > { %625 = dma.vmem_to_hbm [thread:$0]  (%p920_p9), %s1018_s24, 32, %s1016_s18, %s433_s10   ;;  %407 = vst.msk [vmem:[%s1010_s26] sm:$0x3] %vm1006_vm3, %v401_v25 }
  0xcb   : > { %s428_s11 = scalar_lea.sflag [#allocation4], %s955_s25  ;;  %s753_s12 = scalar_lea.vmem %s1025_s5, 32 }
  0xcc   : > { %p754_p12 = scmp.ne.s32.totalorder %s1025_s5, %s753_s12  ;;  %s843_s13 = smov [#allocation5]  }
  0xcd   : > { %s757_s14 = sshll.u32 %s843_s13, 4  ;;  %s758_s14 = int_to_ptr.vmem [resolvable:$false] %s757_s14 }
  0xce   : > { %p755_p0 = pnand %p754_p12, %p920_p9  ;;  %s759_s21 = scalar_lea.vmem %s758_s14, 64 }
  0xcf   : > { %p760_p2 = scmp.lt.s32.totalorder %s1025_s5, %s758_s14  ;;  %p761_p3 = scmp.lt.s32.totalorder %s759_s21, %s753_s12 }
  0xd0   : > { %p756_p1 = pneg %p755_p0 }
  0xd1   : > { %p762_p5 = por %p761_p3, %p760_p2 }
  0xd3   : > { %p763_p6 = pnand %p762_p5, %p756_p1 }
  0xd5   : > { %766 = shalt.err (!%p763_p6)
}
  0xd6   : > { %s767_s24 = scalar_lea.hbm %s1023_s27, 32  ;;  %s771_s18 = scalar_lea.hbm %s1100_s3, 64 }
  0xd7   : > { %p768_p7 = scmp.ne.s32.totalorder %s1023_s27, %s767_s24  ;;  %p772_p13 = scmp.lt.s32.totalorder %s1023_s27, %s1100_s3 }
  0xd8   : > { %p773_p8 = scmp.lt.s32.totalorder %s771_s18, %s767_s24 }
  0xd9   : > { %p769_p10 = pnand %p768_p7, %p920_p9 }
  0xda   : > { %p774_p11 = por %p773_p8, %p772_p13 }
  0xdb   : > { %p770_p4 = pneg %p769_p10 }
  0xdd   : > { %p775_p12 = pnand %p774_p11, %p770_p4 }
  0xdf   : > { %778 = shalt.err (!%p775_p12)
}
  0xe0   : > { %624 = dma.vmem_to_hbm [thread:$0]  (%p920_p9), %s1025_s5, 32, %s1023_s27, %s428_s11  }
  0xe1 PF: > { %s477_s6 = sand.u32 1, %s817_s15   ;;  %p1109_p0 = scmp.ne.s32.totalorder %s1105_s30, 0 }
  0xe2   : > { %p1110_p1 = scmp.ge.s32.totalorder %s837_s20, 2  ;;  %s478_s7 = scalar_lea.sflag [#allocation4], %s477_s6 }
  0xe4   : > { %p633_p2 = pnand %p1110_p1, %p1109_p0 }
  0xe6   : > { %p634_p3 = pneg %p633_p2 }
  0xe8   : > { %808 = dma.done.wait (%p634_p3), %s478_s7, 32  }
  0xe9   : > { %810 = vsyncadd (%p634_p3), %s478_s7, 4294967264  ;;  %s487_s8 = scalar_lea.sflag [#allocation7], %s477_s6 }
  0xea   : > { %812 = dma.done.wait (%p634_p3), %s487_s8, 32  }
  0xeb   : > { %814 = vsyncadd (%p634_p3), %s487_s8, 4294967264  ;;  %s24_s20 = sadd.s32 1, %s837_s20   ;;  %s1111_s15 = smov %s821_s16 }
  0xec   : > { %p21_p5 = scmp.ge.s32.totalorder %s24_s20, 4   ;;  %s1112_s16 = smov %s825_s17 }
  0xed   : > { %s1113_s17 = smov %s925_s29  ;;  %s1114_s18 = smov %s833_s19 }
  0xee   : > { %s1115_s19 = smov %s1117_s23  ;;  %23 = sbr.rel (!%p21_p5) target bundleno = 8 (0x8), region = 97 }
  0xf3   :  { %492 = vsyncpa [#allocation3], 1 }
  0xf4   :  { %494 = vsyncpa [#allocation3 + $0x1], 1 }
  0xf5   :  { %495 = vsyncpa [#allocation4], 1 }
  0xf6   :  { %497 = vsyncpa [#allocation4 + $0x1], 1 }
  0xf7   :  { %498 = vsyncpa [#allocation7], 1 }
  0xf8   :  { %500 = vsyncpa [#allocation7 + $0x1], 1 }

</bundles_post_ra>
